<compile_context>
chip_gen: v7x
topology: tpu7x:2x2x1
jax: 0.10.0
libtpu: 0.0.40
codegen_flags: <defaults>
</compile_context>

<pallas_src>
import jax
import jax.numpy as jnp
from jax.experimental import pallas as pl
from jax.experimental.pallas import tpu as pltpu

EPS = 1e-8  # torch.nn.CosineSimilarity default


# --------------------------------------------------------------------------
# kernel factory
# --------------------------------------------------------------------------
def _make_kernel(hw, lb, nb, need_mask):
    """Partial sum of (1 - cos) for one (batch-block, lane-chunk).

    x_ref, y_ref : (nb, C, lb)   nb samples, lb pixels of H*W along lanes
    o_ref        : (1, 1, 1, 1)  sum over the valid (sample, pixel) pairs
    """

    def kernel(x_ref, y_ref, o_ref):
        x = x_ref[...].astype(jnp.float32)            # (nb, C, lb)
        y = y_ref[...].astype(jnp.float32)

        # Channel (sublane) reductions in a single sweep over the block.
        dot = jnp.sum(x * y, axis=1)                  # (nb, lb)
        xx = jnp.sum(x * x, axis=1)
        yy = jnp.sum(y * y, axis=1)

        # PyTorch clamps each norm to eps before dividing.
        denom = jnp.maximum(jnp.sqrt(xx), EPS) * jnp.maximum(jnp.sqrt(yy), EPS)
        cos = dot / denom                             # (nb, lb)

        if need_mask:
            # Ragged spatial tail: mask out-of-range lanes of `cos`
            # (never zero-pad inputs — that would bias the mean by +1/pixel).
            c = pl.program_id(1)
            lane = jax.lax.broadcasted_iota(jnp.int32, cos.shape, dimension=1)
            valid = (c * lb + lane) < hw
            cos = jnp.where(valid, cos, 0.0)
            n_valid = (nb * jnp.minimum(lb, hw - c * lb)).astype(jnp.float32)
        else:
            n_valid = jnp.float32(nb * lb)

        # sum(1 - cos) over the valid pixels == n_valid - sum(cos)
        o_ref[...] = (n_valid - jnp.sum(cos)).reshape(1, 1, 1, 1)

    return kernel


# --------------------------------------------------------------------------
# tiling helpers
# --------------------------------------------------------------------------
def _cdiv(a, b):
    return -(-a // b)


def _vmem_capacity_bytes():
    try:
        return int(pltpu.get_tpu_info().vmem_capacity_bytes)
    except Exception:
        return 64 << 20  # conservative default (v7x-sized VMEM)


def _largest_divisor_leq(n, cap):
    cap = max(1, min(n, int(cap)))
    for d in range(cap, 0, -1):
        if n % d == 0:
            return d
    return 1


def _choose_tiling(N, C, hw, dsize, block_budget):
    """Pick (samples/block, lanes/block, n_lane_chunks, need_mask)."""
    per_sample = C * hw * dsize
    if per_sample <= block_budget:
        # Whole spatial extent fits: batch samples to amortize per-step cost.
        lb, n_chunks = hw, 1
        nb = _largest_divisor_leq(N, block_budget // per_sample)
    else:
        # Tile the spatial axis in 128-aligned lane chunks within the budget.
        nb = 1
        lb = max(128, ((block_budget // (C * dsize)) // 128) * 128)
        n_chunks = _cdiv(hw, lb)

    # v7x megacore: keep >= 2 independent "parallel" grid steps when possible.
    if (N // nb) * n_chunks < 2:
        if N >= 2:
            nb = _largest_divisor_leq(N, N // 2)
        elif hw > 128:
            lb = 128 * _cdiv(_cdiv(hw, 2), 128)
            n_chunks = _cdiv(hw, lb)

    need_mask = (n_chunks * lb) != hw
    return nb, lb, n_chunks, need_mask


# --------------------------------------------------------------------------
# public entry point
# --------------------------------------------------------------------------
@jax.jit
def cosine_reconstruct(x, y):
    """mean(1 - cosine_similarity(x, y, dim=1, eps=1e-8)) for NCHW inputs."""
    assert x.shape == y.shape
    N, C, H, W = x.shape
    hw = H * W
    dsize = jnp.dtype(x.dtype).itemsize

    vmem_cap = _vmem_capacity_bytes()
    # Per-input-block byte budget: 4x of this (2 inputs x double buffer)
    # stays well inside VMEM on every generation (v7x: 64 MiB -> 4 MiB blocks).
    block_budget = max(1 << 20, vmem_cap // 16)

    nb, lb, n_chunks, need_mask = _choose_tiling(N, C, hw, dsize, block_budget)
    gb = N // nb

    # Free layout plumbing: NCHW is contiguous, so this reshape is metadata.
    xf = x.reshape(N, C, hw)
    yf = y.reshape(N, C, hw)

    block_bytes = nb * C * lb * dsize
    # 2 inputs x 2 pipeline buffers + tiny output + headroom, capped below VMEM.
    vmem_limit = int(min(max(4 * block_bytes + (2 << 20), 32 << 20),
                         int(vmem_cap * 0.75)))

    partials = pl.pallas_call(
        _make_kernel(hw, lb, nb, need_mask),
        out_shape=jax.ShapeDtypeStruct((gb, n_chunks, 1, 1), jnp.float32),
        grid=(gb, n_chunks),
        in_specs=[
            pl.BlockSpec((nb, C, lb), lambda b, c: (b, 0, c)),
            pl.BlockSpec((nb, C, lb), lambda b, c: (b, 0, c)),
        ],
        out_specs=pl.BlockSpec((1, 1, 1, 1), lambda b, c: (b, c, 0, 0)),
        compiler_params=pltpu.CompilerParams(
            dimension_semantics=("parallel", "parallel"),
            vmem_limit_bytes=vmem_limit),
    )(xf, yf)

    # Tiny final combine (gb * n_chunks scalars) -> mean over N*H*W pixels.
    return jnp.sum(partials) / (N * hw)


# --------------------------------------------------------------------------
# pure-JAX reference (correctness check only)
# --------------------------------------------------------------------------
def _ref_forward(x, y):
    x = x.astype(jnp.float32)
    y = y.astype(jnp.float32)
    dot = jnp.sum(x * y, axis=1)
    nx = jnp.maximum(jnp.sqrt(jnp.sum(x * x, axis=1)), EPS)
    ny = jnp.maximum(jnp.sqrt(jnp.sum(y * y, axis=1)), EPS)
    cos = dot / (nx * ny)
    return jnp.mean(1.0 - cos)


if __name__ == "__main__":
    key = jax.random.PRNGKey(0)
    kx, ky = jax.random.split(key)

    N, C, H, W = 2, 4, 16, 16
    x = jax.random.normal(kx, (N, C, H, W), jnp.float32)
    y = jax.random.normal(ky, (N, C, H, W), jnp.float32)

    out = cosine_reconstruct(x, y)
    out = jax.block_until_ready(out)

    ref = _ref_forward(x, y)
    assert out.shape == ()
    assert jnp.allclose(out, ref, atol=1e-5, rtol=1e-5)

    print("KERNEL_OK")
</pallas_src>

<mosaic_0001>
module attributes {stable_mosaic.version = 11 : i64} {
  func.func @kernel(%arg0: i32, %arg1: i32, %arg2: memref<1x4x256xf32, #tpu.memory_space<vmem>>, %arg3: memref<1x4x256xf32, #tpu.memory_space<vmem>>, %arg4: memref<1x1x1x1xf32, #tpu.memory_space<vmem>>) attributes {dimension_semantics = [#tpu.dimension_semantics<parallel>, #tpu.dimension_semantics<parallel>], iteration_bounds = array<i64: 2, 1>, scalar_prefetch = 0 : i64, scratch_operands = 0 : i64, tpu.core_type = #tpu.core_type<tc>, window_params = [{transform_indices = @transform_0, window_bounds = array<i64: 1, 4, 256>}, {transform_indices = @transform_1, window_bounds = array<i64: 1, 4, 256>}, {transform_indices = @transform_2, window_bounds = array<i64: 1, 1, 1, 1>}]} {
    %c0 = arith.constant 0 : index
    %c0_0 = arith.constant 0 : index
    %c0_1 = arith.constant 0 : index
    %0 = vector.load %arg2[%c0, %c0_0, %c0_1] : memref<1x4x256xf32, #tpu.memory_space<vmem>>, vector<1x4x256xf32>
    %c0_2 = arith.constant 0 : index
    %c0_3 = arith.constant 0 : index
    %c0_4 = arith.constant 0 : index
    %1 = vector.load %arg3[%c0_2, %c0_3, %c0_4] : memref<1x4x256xf32, #tpu.memory_space<vmem>>, vector<1x4x256xf32>
    %2 = arith.mulf %0, %1 : vector<1x4x256xf32>
    %cst = arith.constant dense<0.000000e+00> : vector<1x256xf32>
    %3 = vector.multi_reduction <add>, %2, %cst [1] : vector<1x4x256xf32> to vector<1x256xf32>
    %4 = arith.mulf %0, %0 : vector<1x4x256xf32>
    %cst_5 = arith.constant dense<0.000000e+00> : vector<1x256xf32>
    %5 = vector.multi_reduction <add>, %4, %cst_5 [1] : vector<1x4x256xf32> to vector<1x256xf32>
    %6 = arith.mulf %1, %1 : vector<1x4x256xf32>
    %cst_6 = arith.constant dense<0.000000e+00> : vector<1x256xf32>
    %7 = vector.multi_reduction <add>, %6, %cst_6 [1] : vector<1x4x256xf32> to vector<1x256xf32>
    %8 = math.sqrt %5 : vector<1x256xf32>
    %cst_7 = arith.constant 9.99999993E-9 : f32
    %9 = vector.broadcast %cst_7 : f32 to vector<1x256xf32>
    %10 = arith.maximumf %8, %9 : vector<1x256xf32>
    %11 = math.sqrt %7 : vector<1x256xf32>
    %cst_8 = arith.constant 9.99999993E-9 : f32
    %12 = vector.broadcast %cst_8 : f32 to vector<1x256xf32>
    %13 = arith.maximumf %11, %12 : vector<1x256xf32>
    %14 = arith.mulf %10, %13 : vector<1x256xf32>
    %15 = arith.divf %3, %14 : vector<1x256xf32>
    %16 = vector.shape_cast %15 : vector<1x256xf32> to vector<1x1x256xf32>
    %cst_9 = arith.constant dense<0.000000e+00> : vector<1xf32>
    %17 = vector.multi_reduction <add>, %16, %cst_9 [1, 2] : vector<1x1x256xf32> to vector<1xf32>
    %18 = vector.shape_cast %17 : vector<1xf32> to vector<1x1x1xf32>
    %19 = vector.extract %18[0, 0, 0] : f32 from vector<1x1x1xf32>
    %cst_10 = arith.constant 2.560000e+02 : f32
    %20 = arith.subf %cst_10, %19 : f32
    %21 = vector.broadcast %20 : f32 to vector<1x1x1x1xf32>
    %c0_11 = arith.constant 0 : index
    %c0_12 = arith.constant 0 : index
    %c0_13 = arith.constant 0 : index
    %c0_14 = arith.constant 0 : index
    %22 = vector.load %arg4[%c0_11, %c0_12, %c0_13, %c0_14] : memref<1x1x1x1xf32, #tpu.memory_space<vmem>>, vector<1x1x1x1xf32>
    tpu.vector_store %arg4[%c0_11, %c0_12, %c0_13, %c0_14], %21 {strides = array<i32>} : memref<1x1x1x1xf32, #tpu.memory_space<vmem>>, vector<1x1x1x1xf32>,
    return
  }
  func.func @transform_0(%arg0: i32, %arg1: i32) -> (i32, i32, i32) {
    %c0_i32 = arith.constant 0 : i32
    %c0_i32_0 = arith.constant 0 : i32
    return %arg0, %c0_i32, %arg1 : i32, i32, i32
  }
  func.func @transform_1(%arg0: i32, %arg1: i32) -> (i32, i32, i32) {
    %c0_i32 = arith.constant 0 : i32
    %c0_i32_0 = arith.constant 0 : i32
    return %arg0, %c0_i32, %arg1 : i32, i32, i32
  }
  func.func @transform_2(%arg0: i32, %arg1: i32) -> (i32, i32, i32, i32) {
    %c0_i32 = arith.constant 0 : i32
    %c0_i32_0 = arith.constant 0 : i32
    %c0_i32_1 = arith.constant 0 : i32
    return %arg0, %arg1, %c0_i32, %c0_i32_0 : i32, i32, i32, i32
  }
}

</mosaic_0001>

<bundles_post_ra>
// kernel: cosine_reconstruct.1
= control target key start
LH: loop header
LB: loop body
LE: loop exit
PB: predicated region body
PF: predicated region fallthrough
CT: control target
= control target key end

     0   :  { %s503_s9 = smov 0   ;;  %s505_s10 = smov 0   ;;  %s549_s0 = inlined_call_operand.vmem [shape: f32[2,4,256], index: 0, kind: input, shape index: {}]   ;;  %s550_s1 = inlined_call_operand.vmem [shape: f32[2,4,256], index: 1, kind: input, shape index: {}]   ;;  %s551_s2 = inlined_call_operand.vmem [shape: f32[2,1,1,1], index: 2, kind: output, shape index: {}]  }
   0x1   :  { %s507_s11 = smov 0  }
   0x2 LB: > { %s24_s12 = sadd.s32 1, %s482_s10  ;;  %p417_p0 = scmp.ge.s32.totalorder %s486_s11, 1  ;;  %s486_s11 = sphi %s507_s11, %s12_s11   ;;  %s482_s10 = sphi %s505_s10, %s553_s10   ;;  %s478_s9 = sphi %s503_s9, %s552_s9  }
   0x3   : > { %p26_p1 = scmp.ge.s32.totalorder %s24_s12, 2  ;;  %p150_p2 = scmp.lt.s32.totalorder %s486_s11, 3 }
   0x5   : > { %s555_s12 = smov (%p26_p1, %s24_s12), 0  ;;  %p151_p3 = pnand %p417_p0, %p150_p2 }
   0x6   : > { %p187_p4 = scmp.lt.s32.totalorder (!%p151_p3), %s478_s9, 1  ;;  %vm218_vm0 = vcmask (!%p151_p3), 1043456   ;;  %vm307_vm9 = vcmask (!%p151_p3), 1040384   ;;  %vm322_vm10 = vcmask (!%p151_p3), 0  }
   0x7   : > { %154 = sbr.rel (%p151_p3) target bundleno = 279 (0x117), region = 28 }
   0xe   : > { %s557_s9 = smov (!%p187_p4, %s478_s9), 1 }
   0xf   : > { %s424_s13 = sshll.u32 %s557_s9, 3  ;;  %s211_s23 = scalar_lea.vmem %s551_s2, %s557_s9 }
  0x10   : > { %s194_s16 = scalar_lea.vmem %s549_s0, %s424_s13  ;;  %s204_s19 = scalar_lea.vmem %s550_s1, %s424_s13 }
  0x11   : > { %v212_v0 = vld [vmem:[%s194_s16] sm:$0xff] }
  0x12   : > { %v213_v1 = vld [vmem:[%s204_s19] sm:$0xff]  ;;  %v233_v2 = vmul.f32 %v212_v0, %v212_v0 }
  0x13   : > { %v251_v3 = vmul.f32 %v213_v1, %v213_v1  ;;  %v214_v29 = vmul.f32 %v213_v1, %v212_v0 }
  0x14   : > { %v235_v4 = vcombine.high %v233_v2, %v233_v2  ;;  %v237_v5 = vsel %vm218_vm0, %v233_v2, 0.0 }
  0x15   : > { %v238_v6 = vrot.slane %v237_v5, 4  ;;  %v253_v7 = vcombine.high %v251_v3, %v251_v3  ;;  %v255_v8 = vsel %vm218_vm0, %v251_v3, 0.0  ;;  %v219_v34 = vsel %vm218_vm0, %v214_v29, 0.0 }
  0x16   : > { %v244_v9 = vsel %vm218_vm0, %v235_v4, 0.0  ;;  %v256_v10 = vrot.slane %v255_v8, 4  ;;  %v216_v35 = vcombine.high %v214_v29, %v214_v29  ;;  %v220_v37 = vrot.slane %v219_v34, 4 }
  0x17   : > { %v239_v11 = vadd.f32 %v238_v6, %v237_v5  ;;  %v245_v12 = vrot.slane %v244_v9, 4  ;;  %v262_v14 = vsel %vm218_vm0, %v253_v7, 0.0 }
  0x18   : > { %v257_v13 = vadd.f32 %v256_v10, %v255_v8  ;;  %v263_v18 = vrot.slane %v262_v14, 4  ;;  %v226_v38 = vsel %vm218_vm0, %v216_v35, 0.0  ;;  %v221_v39 = vadd.f32 %v220_v37, %v219_v34 }
  0x19   : > { %v240_v15 = vrot.slane %v239_v11, 2  ;;  %v246_v16 = vadd.f32 %v245_v12, %v244_v9  ;;  %v227_v41 = vrot.slane %v226_v38, 4 }
  0x1a   : > { %v258_v17 = vrot.slane %v257_v13, 2  ;;  %v264_v22 = vadd.f32 %v263_v18, %v262_v14  ;;  %v222_v49 = vrot.slane %v221_v39, 2 }
  0x1b   : > { %v241_v19 = vadd.f32 %v240_v15, %v239_v11  ;;  %v247_v20 = vrot.slane %v246_v16, 2  ;;  %v228_v52 = vadd.f32 %v227_v41, %v226_v38 }
  0x1c   : > { %v259_v21 = vadd.f32 %v258_v17, %v257_v13  ;;  %v265_v26 = vrot.slane %v264_v22, 2  ;;  %v223_v2 = vadd.f32 %v222_v49, %v221_v39 }
  0x1d   : > { %v242_v23 = vrot.slane %v241_v19, 1  ;;  %v248_v24 = vadd.f32 %v247_v20, %v246_v16  ;;  %v229_v3 = vrot.slane %v228_v52, 2 }
  0x1e   : > { %v260_v25 = vrot.slane %v259_v21, 1  ;;  %v266_v31 = vadd.f32 %v265_v26, %v264_v22  ;;  %v224_v7 = vrot.slane %v223_v2, 1 }
  0x1f   : > { %v243_v27 = vadd.f32 %v242_v23, %v241_v19  ;;  %v249_v28 = vrot.slane %v248_v24, 1  ;;  %v230_v8 = vadd.f32 %v229_v3, %v228_v52 }
  0x20   : > { %v261_v30 = vadd.f32 %v260_v25, %v259_v21  ;;  %v267_v33 = vrot.slane %v266_v31, 1  ;;  %v225_v9 = vadd.f32 %v224_v7, %v223_v2 }
  0x21   : > { %v250_v32 = vadd.f32 %v249_v28, %v248_v24  ;;  %452 = vrsqrt.f32 %v243_v27  ;;  %vm271_vm1 = vcmp.eq.f32.partialorder %v243_v27, inf  ;;  %v274_v42 = vand.u32 2147483648, %v243_v27 }
  0x22   : > { %454 = vrsqrt.f32 %v261_v30  ;;  %v268_v36 = vadd.f32 %v267_v33, %v266_v31  ;;  %vm273_vm2 = vcmp.eq.f32.partialorder %v243_v27, 0.0  ;;  %vm287_vm3 = vcmp.eq.f32.partialorder %v261_v30, inf }
  0x23   : > { %456 = vrsqrt.f32 %v250_v32  ;;  %v290_v45 = vand.u32 2147483648, %v261_v30  ;;  %vm278_vm4 = vcmp.eq.f32.partialorder %v250_v32, inf  ;;  %v281_v47 = vand.u32 2147483648, %v250_v32 }
  0x24   : > { %458 = vrsqrt.f32 %v268_v36  ;;  %vm289_vm5 = vcmp.eq.f32.partialorder %v261_v30, 0.0  ;;  %vm280_vm6 = vcmp.eq.f32.partialorder %v250_v32, 0.0  ;;  %vm294_vm7 = vcmp.eq.f32.partialorder %v268_v36, inf }
  0x25   : > { %v297_v59 = vand.u32 2147483648, %v268_v36  ;;  %vm296_vm8 = vcmp.eq.f32.partialorder %v268_v36, 0.0  ;;  %v231_v10 = vrot.slane %v230_v8, 1 }
  0x27   : > { %v232_v12 = vadd.f32 %v231_v10, %v230_v8 }
  0x2b   : > { %v453_v40 = vpop.eup %452 }
  0x2c   : > { %v455_v43 = vpop.eup %454  ;;  %v270_v44 = vmul.f32 %v453_v40, %v243_v27 }
  0x2d   : > { %v457_v46 = vpop.eup %456  ;;  %v286_v48 = vmul.f32 %v455_v43, %v261_v30 }
  0x2e   : > { %v272_v50 = vsel %vm271_vm1, %v243_v27, %v270_v44  ;;  %v277_v51 = vmul.f32 %v457_v46, %v250_v32  ;;  %v459_v55 = vpop.eup %458 }
  0x2f   : > { %v275_v53 = vsel %vm273_vm2, %v274_v42, %v272_v50  ;;  %v288_v54 = vsel %vm287_vm3, %v261_v30, %v286_v48  ;;  %v293_v61 = vmul.f32 %v459_v55, %v268_v36 }
  0x30   : > { %v279_v56 = vsel %vm278_vm4, %v250_v32, %v277_v51  ;;  %v283_v57 = vmax.f32 %v275_v53, 1e-08  ;;  %v291_v58 = vsel %vm289_vm5, %v290_v45, %v288_v54 }
  0x31   : > { %v282_v60 = vsel %vm280_vm6, %v281_v47, %v279_v56  ;;  %v299_v62 = vmax.f32 %v291_v58, 1e-08  ;;  %v295_v0 = vsel %vm294_vm7, %v268_v36, %v293_v61 }
  0x32   : > { %v284_v63 = vmax.f32 %v282_v60, 1e-08  ;;  %v298_v4 = vsel %vm296_vm8, %v297_v59, %v295_v0 }
  0x33   : > { %v301_v1 = vmul.f32 %v299_v62, %v283_v57  ;;  %v300_v5 = vmax.f32 %v298_v4, 1e-08 }
  0x35   : > { %460 = vrcp.f32 %v301_v1  ;;  %v302_v6 = vmul.f32 %v300_v5, %v284_v63 }
  0x37   : > { %462 = vrcp.f32 %v302_v6 }
  0x3f   : > { %v461_v11 = vpop.eup %460 }
  0x40   : > { %v304_v13 = vmul.f32 %v461_v11, %v225_v9 }
  0x41   : > { %v463_v14 = vpop.eup %462 }
  0x42   : > { %v306_v15 = vmul.f32 %v463_v14, %v232_v12  ;;  %v308_v16 = vsel %vm307_vm9, %v304_v13, 0.0 }
  0x44   : > { %v309_v17 = vsel %vm307_vm9, %v306_v15, 0.0 }
  0x45   : > { %v310_v18 = vadd.f32 %v309_v17, %v308_v16 }
  0x47   : > { %311 = vadd.xlane.f32.xlu0 %v310_v18 }
  0xd4   : > { %v312_v19 = vpop.xlane.xlu0 %311 }
  0xd5   : > { %v313_v20 = vrot.slane %v312_v19, 4 }
  0xd7   : > { %v314_v21 = vadd.f32 %v313_v20, %v312_v19 }
  0xd9   : > { %v315_v22 = vrot.slane %v314_v21, 2 }
  0xdb   : > { %v316_v23 = vadd.f32 %v315_v22, %v314_v21 }
  0xdd   : > { %v317_v24 = vrot.slane %v316_v23, 1 }
  0xdf   : > { %v318_v25 = vadd.f32 %v317_v24, %v316_v23 }
  0xe1   : > { %426 = vpush %v318_v25 }
 0x112   : > { %s427_s20 = spop %426 }
 0x113   : > { %s320_s24 = ssub.f32 256.0, %s427_s20 }
 0x115   : > { %v321_v26 = vstv %s320_s24 }
 0x116   : > { %323 = vst.msk [vmem:[%s211_s23] sm:$0x1] %vm322_vm10, %v321_v26 }
 0x117 PF: > { %s12_s11 = sadd.s32 1, %s486_s11   ;;  %s552_s9 = smov %s482_s10 }
 0x118   : > { %p9_p5 = scmp.ge.s32.totalorder %s12_s11, 4   ;;  %s553_s10 = smov %s555_s12 }
 0x11a   :  { %11 = sbr.rel (!%p9_p5) target bundleno = 2 (0x2), region = 61 }

</bundles_post_ra>
